<compile_context>
chip_gen: v6e
topology: v6e:2x2x1
jax: 0.10.0
libtpu: 0.0.40
codegen_flags: <defaults>
</compile_context>

<pallas_src>
import jax
import jax.numpy as jnp
from jax.experimental import pallas as pl
from jax.experimental.pallas import tpu as pltpu  # noqa: F401  (TPU backend)


def _round_up(n: int, m: int) -> int:
    return ((n + m - 1) // m) * m


def _fused_linear_tanh_add_relu_kernel(x_ref, w_ref, b_ref, p_ref, o_ref):
    # x_ref: (B, IN)            f32
    # w_ref: (IN, OUT_pad)      f32  -- pre-transposed, lane-padded weight
    # b_ref: (1, OUT_pad)       f32
    # p_ref: (1 or B, OUT_pad)  f32  -- zeros when the module's `param is None`
    # o_ref: (B, OUT)           f32  -- unpadded; masked store on first OUT lanes
    y = jnp.dot(x_ref[...], w_ref[...], preferred_element_type=jnp.float32)
    y = y + b_ref[...]
    v1 = jnp.tanh(y)
    out = jnp.maximum(v1 + p_ref[...], 0.0)
    o_ref[...] = out[:, : o_ref.shape[1]].astype(o_ref.dtype)


def prepare_params(weight, bias):
    """One-time parameter prep (outside the per-call forward).

    Transposes the PyTorch (OUT, IN) weight to (IN, OUT) and zero-pads the OUT
    axis up to a multiple of 128 so the kernel's matmul operand is lane-dense
    and the contraction is a plain x @ W feed to the MXU.
    """
    out_features, in_features = weight.shape
    out_pad = _round_up(out_features, 128)
    w_t_pad = (
        jnp.zeros((in_features, out_pad), weight.dtype)
        .at[:, :out_features]
        .set(weight.T)
    )
    b_pad = jnp.zeros((1, out_pad), bias.dtype).at[0, :out_features].set(bias)
    return w_t_pad, b_pad, out_features


def prepare_param(param, out_features, out_pad, dtype):
    """One-time padding of the optional additive param (outside the hot path)."""
    if param is None:
        return jnp.zeros((1, out_pad), dtype)  # relu(tanh(y) + 0) == relu(tanh(y))
    p2d = jnp.asarray(param, dtype)
    if p2d.ndim == 1:
        p2d = p2d.reshape(1, -1)
    rows = p2d.shape[0]  # 1 or B
    return jnp.zeros((rows, out_pad), dtype).at[:, :out_features].set(p2d)


def model_forward(x, w_t_pad, b_pad, p_pad, out_features):
    """Equivalent of Model.forward: relu(tanh(x @ W.T + b) + param_or_zero).

    x:        (B, IN)          float32
    w_t_pad:  (IN, OUT_pad)    float32  (from prepare_params)
    b_pad:    (1, OUT_pad)     float32
    p_pad:    (1 or B, OUT_pad) float32 (from prepare_param; zeros if param is None)
    Returns   (B, OUT) float32.
    """
    B, IN = x.shape
    return pl.pallas_call(
        _fused_linear_tanh_add_relu_kernel,
        out_shape=jax.ShapeDtypeStruct((B, out_features), x.dtype),
        in_specs=[
            pl.BlockSpec(x.shape, lambda: (0, 0)),
            pl.BlockSpec(w_t_pad.shape, lambda: (0, 0)),
            pl.BlockSpec(b_pad.shape, lambda: (0, 0)),
            pl.BlockSpec(p_pad.shape, lambda: (0, 0)),
        ],
        out_specs=pl.BlockSpec((B, out_features), lambda: (0, 0)),
    )(x, w_t_pad, b_pad, p_pad)


if __name__ == "__main__":
    IN_FEATURES, OUT_FEATURES = 20, 10
    BATCH = 2

    key = jax.random.PRNGKey(0)
    kx, kw, kb, kp = jax.random.split(key, 4)

    # Deterministic init (mirrors nn.Linear's U(-1/sqrt(IN), 1/sqrt(IN)))
    bound = 1.0 / (IN_FEATURES ** 0.5)
    weight = jax.random.uniform(kw, (OUT_FEATURES, IN_FEATURES),
                                minval=-bound, maxval=bound, dtype=jnp.float32)
    bias = jax.random.uniform(kb, (OUT_FEATURES,),
                              minval=-bound, maxval=bound, dtype=jnp.float32)

    x = jax.random.normal(kx, (BATCH, IN_FEATURES), dtype=jnp.float32)
    param = jax.random.normal(kp, (BATCH, OUT_FEATURES), dtype=jnp.float32)

    # One-time parameter prep (transpose + lane padding), done outside the forward.
    w_t_pad, b_pad, out_features = prepare_params(weight, bias)
    OUT_PAD = w_t_pad.shape[1]
    p_none = prepare_param(None, out_features, OUT_PAD, x.dtype)
    p_real = prepare_param(param, out_features, OUT_PAD, x.dtype)

    # Branch 1: param is None -> relu(tanh(linear(x)))
    out_no_param = model_forward(x, w_t_pad, b_pad, p_none, out_features)
    jax.block_until_ready(out_no_param)

    # Branch 2: param provided -> relu(tanh(linear(x)) + param)
    out_with_param = model_forward(x, w_t_pad, b_pad, p_real, out_features)
    jax.block_until_ready(out_with_param)

    # Reference check in plain JAX
    ref1 = jnp.maximum(jnp.tanh(x @ weight.T + bias), 0.0)
    ref2 = jnp.maximum(jnp.tanh(x @ weight.T + bias) + param, 0.0)
    assert out_no_param.shape == (BATCH, OUT_FEATURES)
    assert out_with_param.shape == (BATCH, OUT_FEATURES)
    assert jnp.allclose(out_no_param, ref1, atol=1e-5, rtol=1e-5)
    assert jnp.allclose(out_with_param, ref2, atol=1e-5, rtol=1e-5)

    print("KERNEL_OK")
</pallas_src>

<mosaic_0001>
module attributes {stable_mosaic.version = 11 : i64} {
  func.func @_fused_linear_tanh_add_relu_kernel(%arg0: memref<2x20xf32, #tpu.memory_space<vmem>>, %arg1: memref<20x128xf32, #tpu.memory_space<vmem>>, %arg2: memref<1x128xf32, #tpu.memory_space<vmem>>, %arg3: memref<1x128xf32, #tpu.memory_space<vmem>>, %arg4: memref<2x10xf32, #tpu.memory_space<vmem>>) attributes {dimension_semantics = [], scalar_prefetch = 0 : i64, scratch_operands = 0 : i64, tpu.core_type = #tpu.core_type<tc>} {
    %c0 = arith.constant 0 : index
    %c0_0 = arith.constant 0 : index
    %0 = vector.load %arg0[%c0, %c0_0] : memref<2x20xf32, #tpu.memory_space<vmem>>, vector<2x20xf32>
    %c0_1 = arith.constant 0 : index
    %c0_2 = arith.constant 0 : index
    %1 = vector.load %arg1[%c0_1, %c0_2] : memref<20x128xf32, #tpu.memory_space<vmem>>, vector<20x128xf32>
    %cst = arith.constant dense<0.000000e+00> : vector<2x128xf32>
    %2 = tpu.matmul %0, %1, %cst {dimension_numbers = #tpu.dot_dimension_numbers<[1], [0], [0], [1], [0, 0, 1, 1], [], []>} : vector<2x20xf32>, vector<20x128xf32>, vector<2x128xf32> -> vector<2x128xf32>
    %c0_3 = arith.constant 0 : index
    %c0_4 = arith.constant 0 : index
    %3 = vector.load %arg2[%c0_3, %c0_4] : memref<1x128xf32, #tpu.memory_space<vmem>>, vector<1x128xf32>
    %4 = vector.broadcast %3 : vector<1x128xf32> to vector<2x128xf32>
    %5 = arith.addf %2, %4 : vector<2x128xf32>
    %6 = math.tanh %5 : vector<2x128xf32>
    %c0_5 = arith.constant 0 : index
    %c0_6 = arith.constant 0 : index
    %7 = vector.load %arg3[%c0_5, %c0_6] : memref<1x128xf32, #tpu.memory_space<vmem>>, vector<1x128xf32>
    %8 = vector.broadcast %7 : vector<1x128xf32> to vector<2x128xf32>
    %9 = arith.addf %6, %8 : vector<2x128xf32>
    %cst_7 = arith.constant 0.000000e+00 : f32
    %10 = vector.broadcast %cst_7 : f32 to vector<2x128xf32>
    %11 = arith.maximumf %9, %10 : vector<2x128xf32>
    %12 = vector.extract_strided_slice %11 {offsets = [0, 0], sizes = [2, 10], strides = [1, 1]} : vector<2x128xf32> to vector<2x10xf32>
    %c0_8 = arith.constant 0 : index
    %c0_9 = arith.constant 0 : index
    %13 = vector.load %arg4[%c0_8, %c0_9] : memref<2x10xf32, #tpu.memory_space<vmem>>, vector<2x10xf32>
    tpu.vector_store %arg4[%c0_8, %c0_9], %12 {strides = array<i32>} : memref<2x10xf32, #tpu.memory_space<vmem>>, vector<2x10xf32>,
    return
  }
}

</mosaic_0001>

<bundles_post_ra>
// kernel: tpu_custom_call.1
= control target key start
LH: loop header
LB: loop body
LE: loop exit
PB: predicated region body
PF: predicated region fallthrough
CT: control target
= control target key end

     0   :  { %9 = vsyncpa [#allocation3], 0  ;;  %s300_s0 = inlined_call_operand.hbm [shape: f32[2,20], index: 0, kind: input, shape index: {}]   ;;  %s301_s1 = inlined_call_operand.hbm [shape: f32[20,128], index: 1, kind: input, shape index: {}]   ;;  %s302_s2 = inlined_call_operand.vmem [shape: f32[1,128], index: 2, kind: input, shape index: {}]   ;;  %s303_s3 = inlined_call_operand.vmem [shape: f32[1,128], index: 3, kind: input, shape index: {}]   ;;  %s304_s4 = inlined_call_operand.hbm [shape: f32[2,10], index: 4, kind: output, shape index: {}]  }
   0x1   :  { %10 = vsyncpa [#allocation6], 0 }
   0x2   :  { %11 = vsyncpa [#allocation4], 0  ;;  %s253_s15 = smov [#allocation2]   ;;  %s254_s17 = smov [#allocation5]  }
   0x3   :  { %s18_s16 = sshll.u32 %s253_s15, 4  ;;  %s27_s18 = sshll.u32 %s254_s17, 4  ;;  %s19_s16 = int_to_ptr.vmem [resolvable:$true] %s18_s16  ;;  %s28_s18 = int_to_ptr.vmem [resolvable:$true] %s27_s18 }
   0x4   :  { %s195_s19 = scalar_lea.vmem %s19_s16, 32  ;;  %p200_p1 = scmp.lt.s32.totalorder %s19_s16, %s19_s16 }
   0x5   :  { %p196_p0 = scmp.ne.s32.totalorder %s19_s16, %s195_s19  ;;  %p201_p2 = scmp.lt.s32.totalorder %s195_s19, %s195_s19 }
   0x7   :  { %p202_p3 = por %p201_p2, %p200_p1 }
   0x9   :  { %p203_p4 = pnand %p202_p3, %p196_p0 }
   0xb   :  { %206 = shalt.err (!%p203_p4)
}
   0xc   :  { %21 = dma.hbm_to_vmem [thread:$0]  %s300_s0, 32, %s19_s16, [#allocation3]  }
   0xd   :  { %s215_s22 = scalar_lea.vmem %s28_s18, 384  ;;  %p220_p6 = scmp.lt.s32.totalorder %s28_s18, %s28_s18 }
   0xe   :  { %p216_p5 = scmp.ne.s32.totalorder %s28_s18, %s215_s22  ;;  %p221_p7 = scmp.lt.s32.totalorder %s215_s22, %s215_s22 }
  0x10   :  { %p222_p8 = por %p221_p7, %p220_p6 }
  0x12   :  { %p223_p9 = pnand %p222_p8, %p216_p5 }
  0x14   :  { %226 = shalt.err (!%p223_p9)
}
  0x15   :  { %s255_s23 = smov 128   ;;  %s256_s24 = smov 8  }
  0x16   :  { %33 = dma.hbm_to_vmem [thread:$0]  %s301_s1, 384, %s28_s18, [#allocation6], %s255_s23, %s255_s23, %s256_s24  }
  0x17   :  { %247 = dma.done.wait [#allocation3], 32  }
  0x18   :  { %248 = vsyncadd [#allocation3], 4294967264 }
  0x19   :  { %249 = dma.done.wait [#allocation6], 384  }
  0x1a   :  { %250 = vsyncadd [#allocation6], 4294966912  ;;  %v257_v0 = vmov 0.0   ;;  %vm258_vm0 = vmmov 0   ;;  %vm59_vm1 = vcmask 1043456   ;;  %v46_v2 = vld [vmem:[#allocation5 + $0x8] sm:$0xff] }
  0x1b   :  { %169 = vmatprep.subr.mxu0 %v257_v0  ;;  %175 = vmatprep.mubr.msk.f32.mxu0 %vm258_vm0, %v257_v0  ;;  %v47_v1 = vld [vmem:[#allocation5 + $0x10] sm:$0xf]  ;;  %v45_v3 = vld [vmem:[#allocation5] sm:$0xff]  ;;  %v44_v4 = vld [vmem:[#allocation2] sm:$0x3]  ;;  %vm55_vm2 = vcmask 162816  }
  0x1c   :  { %170 = vmatpush3.msk.msra.mxu0 %vm59_vm1, %v47_v1  ;;  %v161_v5 = vld [vmem:[%s302_s2] ss:$0 sm:$0xff]  ;;  %s259_s29 = smov [#allocation7]   ;;  %vm143_vm3 = vcmask 74752  }
  0x1d   :  { %171 = vmatprep.subr.mxu0 %v257_v0  ;;  %v164_v9 = vld [vmem:[%s303_s3] ss:$0 sm:$0xff]  ;;  %s151_s30 = sshll.u32 %s259_s29, 4  ;;  %s152_s30 = int_to_ptr.vmem [resolvable:$true] %s151_s30 }
  0x1e   :  { %172 = vmatpush3.msra.mxu0 %v46_v2  ;;  %s227_s5 = scalar_lea.vmem %s152_s30, 32  ;;  %p232_p11 = scmp.lt.s32.totalorder %s152_s30, %s152_s30 }
  0x1f   :  { %173 = vmatprep.subr.mxu0 %v257_v0  ;;  %p228_p10 = scmp.ne.s32.totalorder %s152_s30, %s227_s5  ;;  %p233_p12 = scmp.lt.s32.totalorder %s227_s5, %s227_s5 }
  0x20   :  { %174 = vmatpush3.msra.mxu0 %v45_v3 }
  0x21   :  { %176 = vmatmul.mubr.msk.f32.vlgmr.msra.gmra.mxu0 %vm55_vm2, %v44_v4  ;;  %p234_p13 = por %p233_p12, %p232_p11 }
  0x23   :  { %p235_p0 = pnand %p234_p13, %p228_p10 }
  0xe1   :  { %v129_v6 = vpop.f32.mrf.mxu0 }
  0xe2   :  { %v130_v7 = vadd.f32 %v161_v5, %v129_v6 }
  0xe3   :  { %v177_v8 = vpop.f32.mrf.mxu0 }
  0xe4   :  { %185 = vtanh.f32 %v130_v7 }
  0xf1   :  { %v186_v10 = vpop.eup %185 }
  0xf2   :  { %v141_v11 = vadd.f32 %v186_v10, %v164_v9 }
  0xf4   :  { %v142_v12 = vmax.f32 %v141_v11, 0.0 }
  0xf6   :  { %144 = vst.msk [vmem:[#allocation7] sm:$0x3] %vm143_vm3, %v142_v12 }
  0xf7   :  { %238 = shalt.err (!%p235_p0)
}
  0xf8   :  { %154 = dma.vmem_to_hbm [thread:$0]  %s152_s30, 32, %s304_s4, [#allocation4]  }
  0xf9   :  { %251 = dma.done.wait [#allocation4], 32  }
  0xfa   :  { %252 = vsyncadd [#allocation4], 4294967264 }
  0xfb   :  { %158 = vsyncpa [#allocation3], 1 }
  0xfc   :  { %159 = vsyncpa [#allocation6], 1 }
  0xfd   :  { %160 = vsyncpa [#allocation4], 1 }

</bundles_post_ra>
